<compile_context>
chip_gen: v7x
topology: tpu7x:2x2x1
jax: 0.10.0
libtpu: 0.0.40
codegen_flags: <defaults>
</compile_context>

<pallas_src>
import functools

import jax
import jax.numpy as jnp
from jax.experimental import pallas as pl
from jax.experimental.pallas import tpu as pltpu


def _normalize_kernel(x_ref, o_ref, *, power: float):
    # x_ref / o_ref: (TILE_N, D) tile in VMEM.
    x = x_ref[...].astype(jnp.float32)  # f32 accumulation (needed on v5e, safe everywhere)
    if power == 2:
        # Plain multiply (VPU) instead of jnp.power -> guarantees no exp/log lowering.
        pow_sum = jnp.sum(x * x, axis=-1, keepdims=True)
        # rsqrt goes to the EUP slot; broadcast multiply replaces the divide.
        inv_norm = jax.lax.rsqrt(pow_sum)
    else:
        # Keep the exact semantics of the PyTorch module: x.pow(p).sum(1).pow(1/p)
        if power == 1:
            pow_sum = jnp.sum(x, axis=-1, keepdims=True)
        else:
            pow_sum = jnp.sum(jnp.power(x, power), axis=-1, keepdims=True)
        norm = jnp.power(pow_sum, 1.0 / power)
        inv_norm = pl.reciprocal(norm, approx=True)
    o_ref[...] = (x * inv_norm).astype(o_ref.dtype)


def _choose_tile_n(n: int, d: int, dtype, target_bytes: int = 4 * 1024 * 1024) -> int:
    """Pick a large, dtype-aligned row tile sized against a VMEM budget.

    Budget accounts for input + output tiles, double-buffered, in f32:
    ~4 * (tile_n * d * 4) bytes.  target_bytes of a few MiB keeps the
    double-buffered total well under the scoped VMEM limit on v5e/v6e/v7x.
    """
    itemsize = jnp.dtype(dtype).itemsize
    # f32 -> 8-row sublane packing, bf16 -> 16, int8/fp8 -> 32.
    row_align = max(8, 32 // itemsize)
    bytes_per_row = d * 4 * 4  # in + out, double-buffered, f32
    tile = max(row_align, target_bytes // max(bytes_per_row, 1))
    tile = (tile // row_align) * row_align
    # Don't exceed the (aligned-up) batch size.
    n_aligned = ((n + row_align - 1) // row_align) * row_align
    tile = min(tile, n_aligned)
    return max(tile, row_align)


def normalize(x: jax.Array, power: float = 2.0, tile_n: int | None = None) -> jax.Array:
    """L_p normalization over dim 1 (feature dim), matching the PyTorch Normalize."""
    n, d = x.shape
    if tile_n is None:
        tile_n = _choose_tile_n(n, d, x.dtype)

    # Handle arbitrary N: pad to a multiple of tile_n, slice the result back.
    n_grid = pl.cdiv(n, tile_n)
    n_pad = n_grid * tile_n
    x_in = x if n_pad == n else jnp.pad(x, ((0, n_pad - n), (0, 0)))

    kernel = functools.partial(_normalize_kernel, power=power)
    out = pl.pallas_call(
        kernel,
        out_shape=jax.ShapeDtypeStruct((n_pad, d), x.dtype),
        grid_spec=pltpu.PrefetchScalarGridSpec(
            num_scalar_prefetch=0,
            grid=(n_grid,),
            # Keep the full feature dim in one block so the output stays lane-dense
            # (the caller should pad D to a multiple of 128 for best store throughput).
            in_specs=[pl.BlockSpec((tile_n, d), lambda i: (i, 0))],
            out_specs=pl.BlockSpec((tile_n, d), lambda i: (i, 0)),
        ),
        compiler_params=pltpu.CompilerParams(
            dimension_semantics=("parallel",)),
    )(x_in)
    return out[:n] if n_pad != n else out


if __name__ == "__main__":
    key = jax.random.PRNGKey(0)

    def _ref(x, power=2.0):
        norm = jnp.power(jnp.sum(jnp.power(x, power), axis=1, keepdims=True), 1.0 / power)
        return x / norm

    # Small shapes consistent with the module's forward: (batch, feature) embeddings.
    N, D = 16, 128
    x = jax.random.normal(key, (N, D), dtype=jnp.float32)
    out = jax.block_until_ready(normalize(x, power=2.0))
    assert jnp.allclose(out, _ref(x), atol=1e-4, rtol=1e-4), "mismatch vs reference"

    # Non-divisible batch (exercises the cdiv + pad/slice path), narrow head dim.
    N2, D2 = 12, 64
    x2 = jax.random.normal(jax.random.PRNGKey(1), (N2, D2), dtype=jnp.float32)
    out2 = jax.block_until_ready(normalize(x2, power=2.0))
    assert jnp.allclose(out2, _ref(x2), atol=1e-4, rtol=1e-4), "mismatch vs reference (tail)"

    print("KERNEL_OK")
</pallas_src>

<mosaic_0001>
module attributes {stable_mosaic.version = 11 : i64} {
  func.func @_normalize_kernel(%arg0: i32, %arg1: memref<16x128xf32, #tpu.memory_space<vmem>>, %arg2: memref<16x128xf32, #tpu.memory_space<vmem>>) attributes {dimension_semantics = [#tpu.dimension_semantics<parallel>], iteration_bounds = array<i64: 1>, scalar_prefetch = 0 : i64, scratch_operands = 0 : i64, tpu.core_type = #tpu.core_type<tc>, window_params = [{transform_indices = @transform_0, window_bounds = array<i64: 16, 128>}, {transform_indices = @transform_1, window_bounds = array<i64: 16, 128>}]} {
    %c0 = arith.constant 0 : index
    %c0_0 = arith.constant 0 : index
    %0 = vector.load %arg1[%c0, %c0_0] : memref<16x128xf32, #tpu.memory_space<vmem>>, vector<16x128xf32>
    %1 = arith.mulf %0, %0 : vector<16x128xf32>
    %cst = arith.constant dense<0.000000e+00> : vector<16xf32>
    %2 = vector.multi_reduction <add>, %1, %cst [1] : vector<16x128xf32> to vector<16xf32>
    %3 = vector.shape_cast %2 : vector<16xf32> to vector<16x1xf32>
    %4 = math.rsqrt %3 : vector<16x1xf32>
    %5 = vector.broadcast %4 : vector<16x1xf32> to vector<16x128xf32>
    %6 = arith.mulf %0, %5 : vector<16x128xf32>
    %c0_1 = arith.constant 0 : index
    %c0_2 = arith.constant 0 : index
    %7 = vector.load %arg2[%c0_1, %c0_2] : memref<16x128xf32, #tpu.memory_space<vmem>>, vector<16x128xf32>
    tpu.vector_store %arg2[%c0_1, %c0_2], %6 {strides = array<i32>} : memref<16x128xf32, #tpu.memory_space<vmem>>, vector<16x128xf32>,
    return
  }
  func.func @transform_0(%arg0: i32) -> (i32, i32) {
    %c0_i32 = arith.constant 0 : i32
    %c0_i32_0 = arith.constant 0 : i32
    return %arg0, %c0_i32 : i32, i32
  }
  func.func @transform_1(%arg0: i32) -> (i32, i32) {
    %c0_i32 = arith.constant 0 : i32
    %c0_i32_0 = arith.constant 0 : i32
    return %arg0, %c0_i32 : i32, i32
  }
}

</mosaic_0001>

<bundles_post_ra>
// kernel: tpu_custom_call.1
= control target key start
LH: loop header
LB: loop body
LE: loop exit
PB: predicated region body
PF: predicated region fallthrough
CT: control target
= control target key end

     0   :  { %6 = vsyncpa [#allocation3], 0  ;;  %s154_s0 = inlined_call_operand.hbm [shape: f32[16,128], index: 0, kind: input, shape index: {}]   ;;  %s155_s1 = inlined_call_operand.hbm [shape: f32[16,128], index: 1, kind: output, shape index: {}]  }
   0x1   :  { %7 = vsyncpa [#allocation4], 0  ;;  %s110_s6 = smov [#allocation2]   ;;  %s62_s10 = scalar_lea.hbm %s154_s0, 256 }
   0x2   :  { %s13_s7 = sshll.u32 %s110_s6, 4  ;;  %p63_p0 = scmp.ne.s32.totalorder %s154_s0, %s62_s10  ;;  %s14_s7 = int_to_ptr.vmem [resolvable:$true] %s13_s7 }
   0x3   :  { %p66_p1 = scmp.lt.u32.totalorder %s62_s10, %s154_s0 }
   0x5   :  { %p68_p2 = pnand %p66_p1, %p63_p0 }
   0x7   :  { %71 = shalt.err (!%p68_p2)
}
   0x8   :  { %s72_s15 = scalar_lea.vmem %s14_s7, 256  ;;  %p77_p4 = scmp.lt.s32.totalorder %s14_s7, %s14_s7 }
   0x9   :  { %p73_p3 = scmp.ne.s32.totalorder %s14_s7, %s72_s15  ;;  %p78_p5 = scmp.lt.s32.totalorder %s72_s15, %s72_s15 }
   0xb   :  { %p79_p6 = por %p78_p5, %p77_p4 }
   0xd   :  { %p80_p7 = pnand %p79_p6, %p73_p3 }
   0xf   :  { %83 = shalt.err (!%p80_p7)
}
  0x10   :  { %s111_s16 = smov 128   ;;  %s112_s17 = smov 8  }
  0x11   :  { %19 = dma.hbm_to_vmem [thread:$0]  %s154_s0, 256, %s14_s7, [#allocation3], %s111_s16, %s111_s16, %s112_s17  }
  0x12   :  { %106 = dma.done.wait [#allocation3], 256  }
  0x13   :  { %107 = vsyncadd [#allocation3], 4294967040  ;;  %v23_v0 = vld [vmem:[#allocation2] sm:$0xff]  ;;  %v24_v1 = vld [vmem:[#allocation2 + $0x8] sm:$0xff]  ;;  %s113_s20 = smov [#allocation5]  }
  0x14   :  { %v25_v2 = vmul.f32 %v23_v0, %v23_v0  ;;  %v26_v3 = vmul.f32 %v24_v1, %v24_v1  ;;  %s42_s21 = sshll.u32 %s113_s20, 4  ;;  %s43_s21 = int_to_ptr.vmem [resolvable:$true] %s42_s21 }
  0x15   :  { %s84_s0 = scalar_lea.vmem %s43_s21, 256  ;;  %p89_p9 = scmp.lt.s32.totalorder %s43_s21, %s43_s21 }
  0x16   :  { %27 = vadd.xlane.f32.xlu0 %v25_v2  ;;  %p85_p8 = scmp.ne.s32.totalorder %s43_s21, %s84_s0  ;;  %p90_p10 = scmp.lt.s32.totalorder %s84_s0, %s84_s0 }
  0x18   :  { %p91_p11 = por %p90_p10, %p89_p9 }
  0x1a   :  { %29 = vadd.xlane.f32.xlu0 %v26_v3  ;;  %p92_p12 = pnand %p91_p11, %p85_p8 }
  0xa3   :  { %v28_v4 = vpop.xlane.xlu0 %27 }
  0xa4   :  { %58 = vrsqrt.f32 %v28_v4 }
  0xa7   :  { %v30_v5 = vpop.xlane.xlu0 %29 }
  0xa8   :  { %60 = vrsqrt.f32 %v30_v5 }
  0xae   :  { %v59_v6 = vpop.eup %58 }
  0xaf   :  { %v33_v7 = vmul.f32 %v59_v6, %v23_v0 }
  0xb1   :  { %35 = vst [vmem:[#allocation5] sm:$0xff] %v33_v7 }
  0xb2   :  { %v61_v8 = vpop.eup %60 }
  0xb3   :  { %v34_v9 = vmul.f32 %v61_v8, %v24_v1 }
  0xb5   :  { %36 = vst [vmem:[#allocation5 + $0x8] sm:$0xff] %v34_v9 }
  0xb6   :  { %95 = shalt.err (!%p92_p12)
}
  0xb7   :  { %s96_s24 = scalar_lea.hbm %s155_s1, 256 }
  0xb8   :  { %p97_p13 = scmp.ne.s32.totalorder %s155_s1, %s96_s24  ;;  %p100_p0 = scmp.lt.u32.totalorder %s96_s24, %s155_s1 }
  0xba   :  { %p102_p1 = pnand %p100_p0, %p97_p13 }
  0xbc   :  { %105 = shalt.err (!%p102_p1)
}
  0xbd   :  { %48 = dma.vmem_to_hbm [thread:$0]  %s43_s21, 256, %s155_s1, [#allocation4], %s111_s16, %s111_s16, %s112_s17  }
  0xbe   :  { %108 = dma.done.wait [#allocation4], 256  }
  0xbf   :  { %109 = vsyncadd [#allocation4], 4294967040 }
  0xc0   :  { %52 = vsyncpa [#allocation3], 1 }
  0xc1   :  { %53 = vsyncpa [#allocation4], 1 }

</bundles_post_ra>
